<compile_context>
chip_gen: v5e
topology: v5e:2x2
jax: 0.10.0
libtpu: 0.0.40
codegen_flags: <defaults>
</compile_context>

<pallas_src>
import jax
import jax.numpy as jnp
from jax import lax
from jax.experimental import pallas as pl
from jax.experimental.pallas import tpu as pltpu


def _round_up(x: int, m: int) -> int:
    return (x + m - 1) // m * m


def _sublane(itemsize: int) -> int:
    # dtype-native sublane tile: f32 -> 8, bf16/f16 -> 16, int8/fp8 -> 32
    return max(8, 8 * (4 // max(1, itemsize)))


def _vmem_capacity_bytes(default: int = 64 << 20) -> int:
    # Conservative default (v7x per-TC capacity) if the query is unavailable.
    try:
        info = pltpu.get_tpu_info()
        cap = getattr(info, "vmem_capacity_bytes", None)
        if cap:
            return int(cap)
    except Exception:
        pass
    return default


def _make_layernormal_kernel(esp: float, h: int):
    inv_esp = 1.0 / esp
    inv_n = 1.0 / h
    inv_nm1 = 1.0 / max(h - 1, 1)  # torch.std is unbiased (N-1)

    def kernel(x_ref, w_ref, b_ref, o_ref):
        # x_ref: (tile_rows, H); w_ref/b_ref: (1, H).  H is the full hidden dim,
        # so reductions over axis=-1 need no explicit mask.
        x = x_ref[...].astype(jnp.float32)
        mu = jnp.sum(x, axis=-1, keepdims=True) * inv_n
        diff = x - mu
        var = jnp.sum(diff * diff, axis=-1, keepdims=True) * inv_nm1
        # 1 / max(sqrt(var), esp) == min(rsqrt(var), 1/esp) for var >= 0; rsqrt -> EUP slot.
        inv_sigma = jnp.minimum(lax.rsqrt(var), inv_esp)
        out = diff * inv_sigma
        out = out * w_ref[...].astype(jnp.float32) + b_ref[...].astype(jnp.float32)
        o_ref[...] = out.astype(o_ref.dtype)

    return kernel


def _pick_tile_rows(rows: int, h: int, in_bytes: int, out_bytes: int,
                    vmem_budget_bytes: int, sub: int) -> int:
    # VMEM tiles are lane-padded to 128 regardless of the logical block width.
    h_lanes = _round_up(h, 128)
    # Double-buffered input + output blocks plus ~4x f32 on-chip temporaries per element.
    per_row = h_lanes * (2 * in_bytes + 2 * out_bytes + 16)
    max_tile = max(sub, (vmem_budget_bytes // per_row) // sub * sub)

    if rows <= 2 * sub:
        return _round_up(rows, sub)  # too small to be worth splitting

    # >= 2 steps so the pipeline overlaps in/out DMA on single-TC chips; even step
    # count so dimension_semantics=("parallel",) shards evenly across both TCs on v7x.
    steps = max(2, pl.cdiv(rows, max_tile))
    steps += steps % 2
    tile = _round_up(pl.cdiv(rows, steps), sub)
    tile = min(tile, max_tile, _round_up(rows, sub))
    return max(tile, sub)


def layer_normal(x, weight, bias, esp: float = 1e-6, tile_rows: int | None = None,
                 vmem_budget_bytes: int | None = None):
    """x: (..., hidden). weight/bias: (hidden,). Matches LayerNormal.forward."""
    orig_shape = x.shape
    H = orig_shape[-1]
    rows = 1
    for d in orig_shape[:-1]:
        rows *= d
    x2 = x.reshape(rows, H)
    w2 = weight.reshape(1, H)
    b2 = bias.reshape(1, H)

    # Generation-aware VMEM sizing: budget ~half of per-core capacity, compiler
    # limit derived from the budget with headroom and capped below capacity.
    vmem_cap = _vmem_capacity_bytes()
    if vmem_budget_bytes is None:
        vmem_budget_bytes = min(vmem_cap // 2, 64 << 20)
    vmem_budget_bytes = min(int(vmem_budget_bytes), (vmem_cap * 3) // 4)
    vmem_limit = max(32 << 20,
                     min(vmem_cap - (8 << 20), vmem_budget_bytes + (16 << 20)))

    sub = _sublane(x2.dtype.itemsize)
    if tile_rows is None:
        tile_rows = _pick_tile_rows(rows, H, x2.dtype.itemsize, x.dtype.itemsize,
                                    vmem_budget_bytes, sub)
    tile_rows = max(sub, (tile_rows // sub) * sub)

    # Ragged last row block is handled by Pallas (per-row math, bounded write-back).
    grid = (pl.cdiv(rows, tile_rows),)

    itemsize = x.dtype.itemsize
    cost = pl.CostEstimate(
        flops=8 * rows * H,
        transcendentals=rows,
        bytes_accessed=2 * rows * H * itemsize + 2 * H * itemsize,
    )

    out2 = pl.pallas_call(
        _make_layernormal_kernel(esp, H),
        out_shape=jax.ShapeDtypeStruct((rows, H), x.dtype),
        grid_spec=pltpu.PrefetchScalarGridSpec(
            num_scalar_prefetch=0,
            grid=grid,
            in_specs=[
                pl.BlockSpec((tile_rows, H), lambda i: (i, 0)),
                pl.BlockSpec((1, H), lambda i: (0, 0)),
                pl.BlockSpec((1, H), lambda i: (0, 0)),
            ],
            out_specs=pl.BlockSpec((tile_rows, H), lambda i: (i, 0)),
        ),
        compiler_params=pltpu.CompilerParams(
            dimension_semantics=("parallel",),
            vmem_limit_bytes=int(vmem_limit),
        ),
        cost_estimate=cost,
    )(x2, w2, b2)

    return out2.reshape(orig_shape)


def _reference(x, weight, bias, esp=1e-6):
    x32 = x.astype(jnp.float32)
    mu = jnp.mean(x32, axis=-1, keepdims=True)
    n = x.shape[-1]
    var = jnp.sum((x32 - mu) ** 2, axis=-1, keepdims=True) / max(n - 1, 1)
    sigma = jnp.maximum(jnp.sqrt(var), esp)
    out = (x32 - mu) / sigma
    out = out * weight.astype(jnp.float32) + bias.astype(jnp.float32)
    return out.astype(x.dtype)


if __name__ == "__main__":
    key = jax.random.PRNGKey(0)

    # Shapes implied by the module's usage (batch, seq, hidden); small smoke test.
    batch, seq, hidden = 2, 8, 32
    x = jax.random.normal(key, (batch, seq, hidden), dtype=jnp.float32)
    # Parameters as in LayerNormal.__init__: weight=ones, bias=zeros
    weight = jnp.ones((hidden,), dtype=jnp.float32)
    bias = jnp.zeros((hidden,), dtype=jnp.float32)

    out = jax.block_until_ready(layer_normal(x, weight, bias, esp=1e-6))
    ref = _reference(x, weight, bias, esp=1e-6)
    assert out.shape == x.shape and out.dtype == x.dtype
    assert jnp.allclose(out, ref, atol=1e-5, rtol=1e-5), "mismatch (non-128-aligned H)"

    # Lane-aligned hidden + ragged row grid (multi-step pipeline path).
    x2 = jax.random.normal(jax.random.PRNGKey(1), (3, 20, 256), dtype=jnp.float32)
    w2 = jax.random.normal(jax.random.PRNGKey(2), (256,), dtype=jnp.float32)
    b2 = jax.random.normal(jax.random.PRNGKey(3), (256,), dtype=jnp.float32)
    out2 = jax.block_until_ready(layer_normal(x2, w2, b2, esp=1e-6))
    ref2 = _reference(x2, w2, b2, esp=1e-6)
    assert jnp.allclose(out2, ref2, atol=1e-5, rtol=1e-5), "mismatch (aligned H)"

    # bf16 activations: 16-row sublane-aligned tiles, f32 on-chip math.
    xb = jax.random.normal(jax.random.PRNGKey(4), (4, 24, 128), dtype=jnp.bfloat16)
    wb = jnp.ones((128,), dtype=jnp.float32)
    bb = jnp.zeros((128,), dtype=jnp.float32)
    outb = jax.block_until_ready(layer_normal(xb, wb, bb, esp=1e-6))
    refb = _reference(xb, wb, bb, esp=1e-6)
    assert outb.dtype == xb.dtype
    assert jnp.allclose(outb.astype(jnp.float32), refb.astype(jnp.float32),
                        atol=2e-2, rtol=2e-2), "mismatch (bf16)"

    print("KERNEL_OK")
</pallas_src>

<mosaic_0001>
module attributes {stable_mosaic.version = 11 : i64} {
  func.func @kernel(%arg0: i32, %arg1: memref<16x32xf32, #tpu.memory_space<vmem>>, %arg2: memref<1x32xf32, #tpu.memory_space<vmem>>, %arg3: memref<1x32xf32, #tpu.memory_space<vmem>>, %arg4: memref<16x32xf32, #tpu.memory_space<vmem>>) attributes {dimension_semantics = [#tpu.dimension_semantics<parallel>], iteration_bounds = array<i64: 1>, scalar_prefetch = 0 : i64, scratch_operands = 0 : i64, tpu.core_type = #tpu.core_type<tc>, window_params = [{transform_indices = @transform_0, window_bounds = array<i64: 16, 32>}, {pipeline_mode = #tpu.pipeline_mode<synchronous>, transform_indices = @transform_1, window_bounds = array<i64: 1, 32>}, {pipeline_mode = #tpu.pipeline_mode<synchronous>, transform_indices = @transform_2, window_bounds = array<i64: 1, 32>}, {transform_indices = @transform_3, window_bounds = array<i64: 16, 32>}]} {
    %c0 = arith.constant 0 : index
    %c0_0 = arith.constant 0 : index
    %0 = vector.load %arg1[%c0, %c0_0] : memref<16x32xf32, #tpu.memory_space<vmem>>, vector<16x32xf32>
    %cst = arith.constant dense<0.000000e+00> : vector<16xf32>
    %1 = vector.multi_reduction <add>, %0, %cst [1] : vector<16x32xf32> to vector<16xf32>
    %2 = vector.shape_cast %1 : vector<16xf32> to vector<16x1xf32>
    %cst_1 = arith.constant 3.125000e-02 : f32
    %3 = vector.broadcast %cst_1 : f32 to vector<16x1xf32>
    %4 = arith.mulf %2, %3 : vector<16x1xf32>
    %5 = vector.broadcast %4 : vector<16x1xf32> to vector<16x32xf32>
    %6 = arith.subf %0, %5 : vector<16x32xf32>
    %7 = arith.mulf %6, %6 : vector<16x32xf32>
    %cst_2 = arith.constant dense<0.000000e+00> : vector<16xf32>
    %8 = vector.multi_reduction <add>, %7, %cst_2 [1] : vector<16x32xf32> to vector<16xf32>
    %9 = vector.shape_cast %8 : vector<16xf32> to vector<16x1xf32>
    %cst_3 = arith.constant 0.0322580636 : f32
    %10 = vector.broadcast %cst_3 : f32 to vector<16x1xf32>
    %11 = arith.mulf %9, %10 : vector<16x1xf32>
    %12 = math.rsqrt %11 : vector<16x1xf32>
    %cst_4 = arith.constant 1.000000e+06 : f32
    %13 = vector.broadcast %cst_4 : f32 to vector<16x1xf32>
    %14 = arith.minimumf %12, %13 : vector<16x1xf32>
    %15 = vector.broadcast %14 : vector<16x1xf32> to vector<16x32xf32>
    %16 = arith.mulf %6, %15 : vector<16x32xf32>
    %c0_5 = arith.constant 0 : index
    %c0_6 = arith.constant 0 : index
    %17 = vector.load %arg2[%c0_5, %c0_6] : memref<1x32xf32, #tpu.memory_space<vmem>>, vector<1x32xf32>
    %18 = vector.broadcast %17 : vector<1x32xf32> to vector<16x32xf32>
    %19 = arith.mulf %16, %18 : vector<16x32xf32>
    %c0_7 = arith.constant 0 : index
    %c0_8 = arith.constant 0 : index
    %20 = vector.load %arg3[%c0_7, %c0_8] : memref<1x32xf32, #tpu.memory_space<vmem>>, vector<1x32xf32>
    %21 = vector.broadcast %20 : vector<1x32xf32> to vector<16x32xf32>
    %22 = arith.addf %19, %21 : vector<16x32xf32>
    %c0_9 = arith.constant 0 : index
    %c0_10 = arith.constant 0 : index
    %23 = vector.load %arg4[%c0_9, %c0_10] : memref<16x32xf32, #tpu.memory_space<vmem>>, vector<16x32xf32>
    tpu.vector_store %arg4[%c0_9, %c0_10], %22 {strides = array<i32>} : memref<16x32xf32, #tpu.memory_space<vmem>>, vector<16x32xf32>,
    return
  }
  func.func @transform_0(%arg0: i32) -> (i32, i32) {
    %c0_i32 = arith.constant 0 : i32
    %c0_i32_0 = arith.constant 0 : i32
    return %arg0, %c0_i32 : i32, i32
  }
  func.func @transform_1(%arg0: i32) -> (i32, i32) {
    %c0_i32 = arith.constant 0 : i32
    %c0_i32_0 = arith.constant 0 : i32
    %c0_i32_1 = arith.constant 0 : i32
    return %c0_i32, %c0_i32_0 : i32, i32
  }
  func.func @transform_2(%arg0: i32) -> (i32, i32) {
    %c0_i32 = arith.constant 0 : i32
    %c0_i32_0 = arith.constant 0 : i32
    %c0_i32_1 = arith.constant 0 : i32
    return %c0_i32, %c0_i32_0 : i32, i32
  }
  func.func @transform_3(%arg0: i32) -> (i32, i32) {
    %c0_i32 = arith.constant 0 : i32
    %c0_i32_0 = arith.constant 0 : i32
    return %arg0, %c0_i32 : i32, i32
  }
}

</mosaic_0001>

<bundles_post_ra>
// kernel: tpu_custom_call.1
= control target key start
LH: loop header
LB: loop body
LE: loop exit
PB: predicated region body
PF: predicated region fallthrough
CT: control target
= control target key end

     0   :  { %8 = vsyncpa [#allocation3], 0  ;;  %s264_s0 = inlined_call_operand.hbm [shape: f32[16,32], index: 0, kind: input, shape index: {}]   ;;  %s265_s1 = inlined_call_operand.hbm [shape: f32[1,32], index: 1, kind: input, shape index: {}]   ;;  %s266_s2 = inlined_call_operand.vmem [shape: f32[1,32], index: 2, kind: input, shape index: {}]   ;;  %s267_s3 = inlined_call_operand.hbm [shape: f32[16,32], index: 3, kind: output, shape index: {}]  }
   0x1   :  { %9 = vsyncpa [#allocation6], 0 }
   0x2   :  { %10 = vsyncpa [#allocation4], 0  ;;  %s15_s14 = sshll.u32 %s264_s0, 4  ;;  %s215_s15 = smov [#allocation2]   ;;  %s16_s14 = int_to_ptr.hbm [resolvable:$true] %s15_s14 }
   0x3   :  { %s17_s16 = sshll.u32 %s215_s15, 4  ;;  %s29_s19 = sshll.u32 %s265_s1, 4  ;;  %s18_s16 = int_to_ptr.vmem [resolvable:$true] %s17_s16  ;;  %s30_s19 = int_to_ptr.hbm [resolvable:$true] %s29_s19 }
   0x4   :  { %s216_s20 = smov 128   ;;  %s217_s21 = smov 8  }
   0x5   :  { %23 = dma.hbm_to_vmem [thread:$0]  %s16_s14, 256, %s18_s16, [#allocation3], %s216_s20, %s216_s20, %s217_s21  }
   0x6   :  { %s218_s22 = smov [#allocation5]  }
   0x7   :  { %s31_s23 = sshll.u32 %s218_s22, 4  ;;  %s32_s23 = int_to_ptr.vmem [resolvable:$true] %s31_s23 }
   0x8   :  { %34 = dma.hbm_to_vmem [thread:$0]  %s30_s19, 16, %s32_s23, [#allocation6]  }
   0x9   :  { %209 = dma.done.wait [#allocation3], 256  }
   0xa   :  { %210 = vsyncadd [#allocation3], 4294967040 }
   0xb   :  { %211 = dma.done.wait [#allocation6], 16  }
   0xc   :  { %212 = vsyncadd [#allocation6], 4294967280  ;;  %vm47_vm0 = vcmask 261120   ;;  %v45_v0 = vld [vmem:[#allocation2] sm:$0xff]  ;;  %v46_v2 = vld [vmem:[#allocation2 + $0x8] sm:$0xff]  ;;  %s219_s24 = smov [#allocation7]  }
   0xd   :  { %v48_v1 = vsel %vm47_vm0, %v45_v0, 0.0  ;;  %v51_v3 = vsel %vm47_vm0, %v46_v2, 0.0  ;;  %v131_v29 = vld [vmem:[#allocation5] ss:$0 sm:$0xff]  ;;  %v132_v32 = vld [vmem:[%s266_s2] ss:$0 sm:$0xff] }
   0xe   :  { %49 = vadd.xlane.f32.xlu0 %v48_v1  ;;  %s110_s25 = sshll.u32 %s219_s24, 4  ;;  %s112_s28 = sshll.u32 %s267_s3, 4  ;;  %s111_s25 = int_to_ptr.vmem [resolvable:$true] %s110_s25  ;;  %s113_s28 = int_to_ptr.hbm [resolvable:$true] %s112_s28 }
  0x16   :  { %52 = vadd.xlane.f32.xlu0 %v51_v3 }
  0x81   :  { %v50_v4 = vpop.xlane.xlu0 %49 }
  0x82   :  { %v54_v5 = vmul.f32 0.03125, %v50_v4 }
  0x84   :  { %v56_v6 = vsub.f32 %v45_v0, %v54_v5 }
  0x86   :  { %v58_v7 = vmul.f32 %v56_v6, %v56_v6 }
  0x88   :  { %v60_v8 = vsel %vm47_vm0, %v58_v7, 0.0 }
  0x89   :  { %61 = vadd.xlane.f32.xlu1 %v60_v8  ;;  %v53_v9 = vpop.xlane.xlu0 %52 }
  0x8a   :  { %v55_v10 = vmul.f32 0.03125, %v53_v9 }
  0x8c   :  { %v57_v11 = vsub.f32 %v46_v2, %v55_v10 }
  0x8e   :  { %v59_v12 = vmul.f32 %v57_v11, %v57_v11 }
  0x90   :  { %v63_v13 = vsel %vm47_vm0, %v59_v12, 0.0 }
  0x91   :  { %64 = vadd.xlane.f32.xlu1 %v63_v13 }
  0xfc   :  { %v62_v14 = vpop.xlane.xlu1 %61 }
  0xfd   :  { %v66_v15 = vmul.f32 0.032258064, %v62_v14 }
  0xff   :  { %133 = vrsqrt.f32 %v66_v15  ;;  %vm74_vm2 = vweird.f32 %v66_v15 }
 0x104   :  { %v65_v16 = vpop.xlane.xlu1 %64 }
 0x105   :  { %v134_v17 = vpop.eup %133  ;;  %v67_v18 = vmul.f32 0.032258064, %v65_v16 }
 0x106   :  { %v69_v19 = vmul.f32 %v134_v17, %v66_v15  ;;  %vm75_vm1 = vweird.f32 %v134_v17 }
 0x107   :  { %135 = vrsqrt.f32 %v67_v18  ;;  %vm76_vm3 = vmor %vm74_vm2, %vm75_vm1  ;;  %vm84_vm5 = vweird.f32 %v67_v18 }
 0x108   :  { %v70_v20 = vmul.f32 %v134_v17, %v69_v19 }
 0x10a   :  { %v71_v21 = vmul.f32 0.5, %v70_v20 }
 0x10c   :  { %v72_v22 = vsub.f32 1.5, %v71_v21 }
 0x10d   :  { %v136_v23 = vpop.eup %135 }
 0x10e   :  { %v73_v24 = vmul.f32 %v134_v17, %v72_v22  ;;  %v79_v25 = vmul.f32 %v136_v23, %v67_v18  ;;  %vm85_vm4 = vweird.f32 %v136_v23 }
 0x10f   :  { %vm86_vm6 = vmor %vm84_vm5, %vm85_vm4 }
 0x110   :  { %v77_v26 = vsel %vm76_vm3, %v134_v17, %v73_v24  ;;  %v80_v27 = vmul.f32 %v136_v23, %v79_v25 }
 0x111   :  { %v88_v28 = vmin.f32 %v77_v26, 1000000.0 }
 0x112   :  { %v81_v30 = vmul.f32 0.5, %v80_v27 }
 0x113   :  { %v90_v31 = vmul.f32 %v88_v28, %v56_v6 }
 0x114   :  { %v82_v33 = vsub.f32 1.5, %v81_v30 }
 0x115   :  { %v96_v34 = vmul.f32 %v131_v29, %v90_v31 }
 0x116   :  { %v83_v35 = vmul.f32 %v136_v23, %v82_v33 }
 0x117   :  { %v102_v36 = vadd.f32 %v132_v32, %v96_v34 }
 0x118   :  { %v87_v37 = vsel %vm86_vm6, %v136_v23, %v83_v35 }
 0x119   :  { %v89_v38 = vmin.f32 %v87_v37, 1000000.0  ;;  %104 = vst.msk [vmem:[#allocation7] sm:$0xff] %vm47_vm0, %v102_v36 }
 0x11b   :  { %v91_v39 = vmul.f32 %v89_v38, %v57_v11 }
 0x11d   :  { %v97_v40 = vmul.f32 %v131_v29, %v91_v39 }
 0x11f   :  { %v103_v41 = vadd.f32 %v132_v32, %v97_v40 }
 0x121   :  { %105 = vst.msk [vmem:[#allocation7 + $0x8] sm:$0xff] %vm47_vm0, %v103_v41 }
 0x122   :  { %118 = dma.vmem_to_hbm [thread:$0]  %s111_s25, 256, %s113_s28, [#allocation4], %s216_s20, %s216_s20, %s217_s21  }
 0x123   :  { %213 = dma.done.wait [#allocation4], 256  }
 0x124   :  { %214 = vsyncadd [#allocation4], 4294967040 }
 0x125   :  { %123 = vsyncpa [#allocation3], 1 }
 0x126   :  { %124 = vsyncpa [#allocation6], 1 }
 0x127   :  { %125 = vsyncpa [#allocation4], 1 }

</bundles_post_ra>
